<compile_context>
chip_gen: v6e
topology: v6e:2x2x1
jax: 0.10.0
libtpu: 0.0.40
codegen_flags: <defaults>
</compile_context>

<pallas_src>
import functools

import jax
import jax.numpy as jnp
from jax.experimental import pallas as pl
from jax.experimental.pallas import tpu as pltpu


def _round_up(x, m):
    return ((x + m - 1) // m) * m


def _sn_conv_kernel(x_ref, w_ref, b_ref, o_ref, *, kh, stride, th, wo_pad, neg_slope):
    # x_ref: (1, Hp, Wo_pad, kw*Cin)  width-packed padded image of batch item b
    #                                  (resident across the cout-tile / row-tile axes)
    # w_ref: (kh, kw*Cin, TN)          spectral-normalized weights for this Cout tile
    # b_ref: (1, TN)                   bias for this Cout tile (f32)
    # o_ref: (1, th, Wo_pad, TN)       output tile (compute/out dtype)
    t = pl.program_id(2)                      # row-tile index
    oh0 = t * th                              # first output row of this tile
    kwcin = x_ref.shape[-1]
    tm = th * wo_pad

    def tap(ih):
        if stride == 1:
            xs = x_ref[0, pl.ds(oh0 + ih, th), :, :]
        else:
            # TODO(synk): stride>1 uses a strided pl.ds on the row axis; only the
            # stride==1 path is exercised/validated by the demo below.
            xs = x_ref[0, pl.ds(oh0 * stride + ih, th, stride), :, :]
        a = xs.reshape(tm, kwcin)             # free sublane collapse (wo_pad % 8 == 0)
        return jnp.dot(a, w_ref[ih], preferred_element_type=jnp.float32)

    # Value-chained accumulation over the kh kernel rows: K = kw*Cin per dot, a
    # single f32 value chain (no scratch read-modify-write), one store per step.
    acc = tap(0)
    for ih in range(1, kh):
        acc = acc + tap(ih)

    y = acc + b_ref[...]                      # bias add in f32
    y = jnp.where(y >= 0, y, neg_slope * y)   # LeakyReLU(0.2) in f32
    o_ref[0] = y.reshape(th, wo_pad, -1).astype(o_ref.dtype)


def spectral_normalize(weight, u_init, n_power_iterations=1, eps=1e-12):
    """Mirror torch.nn.utils.spectral_norm forward: power iteration, W / sigma."""
    # TODO(synk): PyTorch updates u in-place in train mode and skips iteration in
    # eval mode; this stateless version always runs one iteration and discards u.
    cout = weight.shape[0]
    w_mat = weight.reshape(cout, -1)
    u = u_init / jnp.maximum(jnp.linalg.norm(u_init), eps)
    v = None
    for _ in range(n_power_iterations):
        v = w_mat.T @ u
        v = v / jnp.maximum(jnp.linalg.norm(v), eps)
        u = w_mat @ v
        u = u / jnp.maximum(jnp.linalg.norm(u), eps)
    sigma = u @ (w_mat @ v)
    return weight / sigma


def sn_conv_unit(x_nchw, weight, bias, u_init, *, stride=1, padding=0,
                 neg_slope=0.2, compute_dtype=jnp.bfloat16, out_dtype=jnp.bfloat16,
                 target_acc_elems=32768):
    """Forward pass of SNConvUnit.

    x_nchw: (N, Cin, H, W); weight: (Cout, Cin, KH, KW) (un-normalized, like
    weight_orig); bias: (Cout,); u_init: (Cout,) power-iteration vector.
    Returns (N, Cout, Ho, Wo) in out_dtype (bf16 by default).
    """
    n, cin, h, w = x_nchw.shape
    cout, _, kh, kw = weight.shape
    ho = (h + 2 * padding - kh) // stride + 1
    wo = (w + 2 * padding - kw) // stride + 1
    hp = h + 2 * padding
    wo_pad = _round_up(wo, 8)        # sublane-aligned output width
    kwcin = kw * cin

    # --- parameter setup (glue): spectral norm, (kh, kw*cin, cout) layout, lane pad
    w_sn = spectral_normalize(weight, u_init)
    cout_pad = _round_up(cout, 128)
    w_k = jnp.transpose(w_sn, (2, 3, 1, 0)).reshape(kh, kwcin, cout)
    w_k = jnp.pad(w_k, ((0, 0), (0, 0), (0, cout_pad - cout))).astype(compute_dtype)
    b_row = jnp.pad(bias.astype(jnp.float32), (0, cout_pad - cout)).reshape(1, cout_pad)

    # --- input layout glue: NCHW->NHWC, pad, pack the kw width taps into lanes ---
    # x_packed[n, h, ow, iw*cin + c] = x_pad[n, h, ow*stride + iw, c]
    # TODO(synk): an NHWC end-to-end model would drop both transposes entirely.
    x_nhwc = jnp.transpose(x_nchw, (0, 2, 3, 1))
    x_pad = jnp.pad(x_nhwc, ((0, 0), (padding, padding), (padding, padding), (0, 0)))
    w_last = (wo - 1) * stride + 1
    x_packed = jnp.concatenate(
        [x_pad[:, :, iw:iw + w_last:stride, :] for iw in range(kw)], axis=-1)
    if wo_pad != wo:
        x_packed = jnp.pad(x_packed, ((0, 0), (0, 0), (0, wo_pad - wo), (0, 0)))
    x_packed = x_packed.astype(compute_dtype)        # (n, hp, wo_pad, kw*cin)

    # --- tiling: TN 256-wide when possible (2x256 MXU), TM*TN ~ target_acc_elems ---
    tn = 256 if cout_pad % 256 == 0 else 128
    n_tn = cout_pad // tn
    th = max(1, min(ho, target_acc_elems // (tn * wo_pad)))
    while ho % th:
        th -= 1
    n_th = ho // th
    tm = th * wo_pad

    # --- generation-aware VMEM budget + scheduler cost hint -----------------------
    itm = jnp.dtype(compute_dtype).itemsize
    oitm = jnp.dtype(out_dtype).itemsize
    est = (2 * hp * wo_pad * _round_up(kwcin, 128) * itm       # x block (2 bufs)
           + 2 * kh * _round_up(kwcin, 8) * tn * itm           # weight block
           + 2 * th * wo_pad * tn * oitm                       # out block
           + 2 * 8 * tn * 4                                    # bias
           + tm * tn * 4)                                      # value-chain spill slack
    try:
        phys = int(pltpu.get_tpu_info().vmem_capacity_bytes)   # 64 MiB v7x, 128 MiB v5e/v6e
    except Exception:
        phys = 64 * 2 ** 20                                    # conservative fallback
    vmem_limit = int(min(max(4 * est, 16 * 2 ** 20), 0.6 * phys))
    vmem_limit = int(min(max(vmem_limit, est), 0.9 * phys))    # never below per-step need
    # TODO(synk): for images where 2x the packed-image block exceeds the budget,
    # switch the x BlockSpec to a row-band-with-halo block and/or single-buffer the
    # rarely-changing x / weight blocks (pipeline_mode=pl.Buffered(1)).

    m_total = n * ho * wo_pad
    flops = 2 * m_total * (kh * kwcin) * cout_pad
    bytes_accessed = int(x_packed.size * itm
                         + n * w_k.size * itm                  # weights re-fetched per batch item
                         + m_total * cout_pad * oitm
                         + cout_pad * 4)

    kernel = functools.partial(_sn_conv_kernel, kh=kh, stride=stride,
                               th=th, wo_pad=wo_pad, neg_slope=neg_slope)

    out4 = pl.pallas_call(
        kernel,
        out_shape=jax.ShapeDtypeStruct((n, ho, wo_pad, cout_pad), out_dtype),
        grid_spec=pltpu.PrefetchScalarGridSpec(
            num_scalar_prefetch=0,
            grid=(n, n_tn, n_th),
            in_specs=[
                # whole packed image of batch item b: resident across (j, t)
                pl.BlockSpec((1, hp, wo_pad, kwcin), lambda b, j, t: (b, 0, 0, 0)),
                # weights / bias for Cout tile j: resident across t
                pl.BlockSpec((kh, kwcin, tn), lambda b, j, t: (0, 0, j)),
                pl.BlockSpec((1, tn), lambda b, j, t: (0, j)),
            ],
            out_specs=pl.BlockSpec((1, th, wo_pad, tn), lambda b, j, t: (b, t, 0, j)),
        ),
        compiler_params=pltpu.CompilerParams(
            dimension_semantics=("parallel", "parallel", "parallel"),
            vmem_limit_bytes=vmem_limit),
        cost_estimate=pl.CostEstimate(flops=flops, transcendentals=0,
                                      bytes_accessed=bytes_accessed),
    )(x_packed, w_k, b_row)

    # epilogue glue: drop lane/width pad, back to NCHW for the PyTorch contract
    out = out4[:, :, :wo, :cout]
    return jnp.transpose(out, (0, 3, 1, 2))


if __name__ == "__main__":
    # SNConvUnit(in_channels=4, out_channels=8, kernel_size=3, stride=1, padding=1)
    N, Cin, H, W = 2, 4, 16, 16
    Cout, K = 8, 3
    stride, padding = 1, 1

    key = jax.random.PRNGKey(0)
    k_w, k_b, k_u, k_x = jax.random.split(key, 4)

    fan_in = Cin * K * K
    # kaiming_normal_ (fan_in, gain sqrt(2))
    weight = jax.random.normal(k_w, (Cout, Cin, K, K), jnp.float32) * jnp.sqrt(2.0 / fan_in)
    # PyTorch Conv2d default bias init: U(-1/sqrt(fan_in), 1/sqrt(fan_in))
    bound = 1.0 / jnp.sqrt(float(fan_in))
    bias = jax.random.uniform(k_b, (Cout,), jnp.float32, -bound, bound)
    # spectral_norm's power-iteration vector u
    u0 = jax.random.normal(k_u, (Cout,), jnp.float32)

    x = jax.random.normal(k_x, (N, Cin, H, W), jnp.float32)

    y = sn_conv_unit(x, weight, bias, u0, stride=stride, padding=padding)
    y = jax.block_until_ready(y)
    assert y.shape == (N, Cout, H, W)

    # Silent correctness check: compare against a high-precision JAX conv applied to
    # the same bf16-rounded activations/weights the kernel feeds the MXU.  The kernel
    # accumulates in f32, so the remaining error is summation order + bf16 output
    # rounding (hence the 2e-2 tolerance).
    w_sn = spectral_normalize(weight, u0)
    x_c = x.astype(jnp.bfloat16).astype(jnp.float32)
    w_c = w_sn.astype(jnp.bfloat16).astype(jnp.float32)
    y_ref = jax.lax.conv_general_dilated(
        x_c, w_c, window_strides=(stride, stride),
        padding=[(padding, padding), (padding, padding)],
        dimension_numbers=("NCHW", "OIHW", "NCHW"),
        precision=jax.lax.Precision.HIGHEST)
    y_ref = y_ref + bias.reshape(1, Cout, 1, 1)
    y_ref = jnp.where(y_ref >= 0, y_ref, 0.2 * y_ref)
    err = float(jnp.max(jnp.abs(y.astype(jnp.float32) - y_ref)))
    assert err < 2e-2, f"max abs err {err}"

    print("KERNEL_OK")
</pallas_src>

<mosaic_0001>
module attributes {stable_mosaic.version = 11 : i64} {
  func.func @_sn_conv_kernel(%arg0: i32, %arg1: i32, %arg2: i32, %arg3: memref<1x18x16x12xbf16, #tpu.memory_space<vmem>>, %arg4: memref<3x12x128xbf16, #tpu.memory_space<vmem>>, %arg5: memref<1x128xf32, #tpu.memory_space<vmem>>, %arg6: memref<1x16x16x128xbf16, #tpu.memory_space<vmem>>) attributes {dimension_semantics = [#tpu.dimension_semantics<parallel>, #tpu.dimension_semantics<parallel>, #tpu.dimension_semantics<parallel>], iteration_bounds = array<i64: 2, 1, 1>, scalar_prefetch = 0 : i64, scratch_operands = 0 : i64, tpu.core_type = #tpu.core_type<tc>, window_params = [{transform_indices = @transform_0, window_bounds = array<i64: 1, 18, 16, 12>}, {transform_indices = @transform_1, window_bounds = array<i64: 3, 12, 128>}, {transform_indices = @transform_2, window_bounds = array<i64: 1, 128>}, {transform_indices = @transform_3, window_bounds = array<i64: 1, 16, 16, 128>}]} {
    %c16_i32 = arith.constant 16 : i32
    %0 = arith.muli %arg2, %c16_i32 : i32
    %c0_i32 = arith.constant 0 : i32
    %1 = arith.addi %0, %c0_i32 : i32
    %c0 = arith.constant 0 : index
    %2 = arith.index_cast %1 : i32 to index
    %c0_0 = arith.constant 0 : index
    %c0_1 = arith.constant 0 : index
    %3 = vector.load %arg3[%c0, %2, %c0_0, %c0_1] : memref<1x18x16x12xbf16, #tpu.memory_space<vmem>>, vector<1x16x16x12xbf16>
    %4 = vector.shape_cast %3 : vector<1x16x16x12xbf16> to vector<16x16x12xbf16>
    %5 = vector.shape_cast %4 : vector<16x16x12xbf16> to vector<256x12xbf16>
    %c0_2 = arith.constant 0 : index
    %c0_3 = arith.constant 0 : index
    %c0_4 = arith.constant 0 : index
    %6 = vector.load %arg4[%c0_2, %c0_3, %c0_4] : memref<3x12x128xbf16, #tpu.memory_space<vmem>>, vector<1x12x128xbf16>
    %7 = vector.shape_cast %6 : vector<1x12x128xbf16> to vector<12x128xbf16>
    %cst = arith.constant dense<0.000000e+00> : vector<256x128xf32>
    %8 = tpu.matmul %5, %7, %cst {dimension_numbers = #tpu.dot_dimension_numbers<[1], [0], [0], [1], [0, 0, 1, 1], [], []>} : vector<256x12xbf16>, vector<12x128xbf16>, vector<256x128xf32> -> vector<256x128xf32>
    %c1_i32 = arith.constant 1 : i32
    %9 = arith.addi %0, %c1_i32 : i32
    %c0_5 = arith.constant 0 : index
    %10 = arith.index_cast %9 : i32 to index
    %c0_6 = arith.constant 0 : index
    %c0_7 = arith.constant 0 : index
    %11 = vector.load %arg3[%c0_5, %10, %c0_6, %c0_7] : memref<1x18x16x12xbf16, #tpu.memory_space<vmem>>, vector<1x16x16x12xbf16>
    %12 = vector.shape_cast %11 : vector<1x16x16x12xbf16> to vector<16x16x12xbf16>
    %13 = vector.shape_cast %12 : vector<16x16x12xbf16> to vector<256x12xbf16>
    %c1 = arith.constant 1 : index
    %c0_8 = arith.constant 0 : index
    %c0_9 = arith.constant 0 : index
    %14 = vector.load %arg4[%c1, %c0_8, %c0_9] : memref<3x12x128xbf16, #tpu.memory_space<vmem>>, vector<1x12x128xbf16>
    %15 = vector.shape_cast %14 : vector<1x12x128xbf16> to vector<12x128xbf16>
    %cst_10 = arith.constant dense<0.000000e+00> : vector<256x128xf32>
    %16 = tpu.matmul %13, %15, %cst_10 {dimension_numbers = #tpu.dot_dimension_numbers<[1], [0], [0], [1], [0, 0, 1, 1], [], []>} : vector<256x12xbf16>, vector<12x128xbf16>, vector<256x128xf32> -> vector<256x128xf32>
    %17 = arith.addf %8, %16 : vector<256x128xf32>
    %c2_i32 = arith.constant 2 : i32
    %18 = arith.addi %0, %c2_i32 : i32
    %c0_11 = arith.constant 0 : index
    %19 = arith.index_cast %18 : i32 to index
    %c0_12 = arith.constant 0 : index
    %c0_13 = arith.constant 0 : index
    %20 = vector.load %arg3[%c0_11, %19, %c0_12, %c0_13] : memref<1x18x16x12xbf16, #tpu.memory_space<vmem>>, vector<1x16x16x12xbf16>
    %21 = vector.shape_cast %20 : vector<1x16x16x12xbf16> to vector<16x16x12xbf16>
    %22 = vector.shape_cast %21 : vector<16x16x12xbf16> to vector<256x12xbf16>
    %c2 = arith.constant 2 : index
    %c0_14 = arith.constant 0 : index
    %c0_15 = arith.constant 0 : index
    %23 = vector.load %arg4[%c2, %c0_14, %c0_15] : memref<3x12x128xbf16, #tpu.memory_space<vmem>>, vector<1x12x128xbf16>
    %24 = vector.shape_cast %23 : vector<1x12x128xbf16> to vector<12x128xbf16>
    %cst_16 = arith.constant dense<0.000000e+00> : vector<256x128xf32>
    %25 = tpu.matmul %22, %24, %cst_16 {dimension_numbers = #tpu.dot_dimension_numbers<[1], [0], [0], [1], [0, 0, 1, 1], [], []>} : vector<256x12xbf16>, vector<12x128xbf16>, vector<256x128xf32> -> vector<256x128xf32>
    %26 = arith.addf %17, %25 : vector<256x128xf32>
    %c0_17 = arith.constant 0 : index
    %c0_18 = arith.constant 0 : index
    %27 = vector.load %arg5[%c0_17, %c0_18] : memref<1x128xf32, #tpu.memory_space<vmem>>, vector<1x128xf32>
    %28 = vector.broadcast %27 : vector<1x128xf32> to vector<256x128xf32>
    %29 = arith.addf %26, %28 : vector<256x128xf32>
    %cst_19 = arith.constant 0.000000e+00 : f32
    %30 = vector.broadcast %cst_19 : f32 to vector<256x128xf32>
    %31 = arith.cmpf oge, %29, %30 : vector<256x128xf32>
    %cst_20 = arith.constant 2.000000e-01 : f32
    %32 = vector.broadcast %cst_20 : f32 to vector<256x128xf32>
    %33 = arith.mulf %32, %29 : vector<256x128xf32>
    %34 = arith.select %31, %29, %33 : vector<256x128xi1>, vector<256x128xf32>
    %35 = vector.shape_cast %34 : vector<256x128xf32> to vector<16x16x128xf32>
    %36 = arith.truncf %35 : vector<16x16x128xf32> to vector<16x16x128xbf16>
    %c0_21 = arith.constant 0 : index
    %c0_22 = arith.constant 0 : index
    %c0_23 = arith.constant 0 : index
    %c0_24 = arith.constant 0 : index
    %37 = vector.load %arg6[%c0_21, %c0_22, %c0_23, %c0_24] : memref<1x16x16x128xbf16, #tpu.memory_space<vmem>>, vector<1x16x16x128xbf16>
    %38 = vector.shape_cast %37 : vector<1x16x16x128xbf16> to vector<16x16x128xbf16>
    %39 = vector.shape_cast %36 : vector<16x16x128xbf16> to vector<1x16x16x128xbf16>
    tpu.vector_store %arg6[%c0_21, %c0_22, %c0_23, %c0_24], %39 {strides = array<i32>} : memref<1x16x16x128xbf16, #tpu.memory_space<vmem>>, vector<1x16x16x128xbf16>,
    return
  }
  func.func @transform_0(%arg0: i32, %arg1: i32, %arg2: i32) -> (i32, i32, i32, i32) {
    %c0_i32 = arith.constant 0 : i32
    %c0_i32_0 = arith.constant 0 : i32
    %c0_i32_1 = arith.constant 0 : i32
    %c0_i32_2 = arith.constant 0 : i32
    return %arg0, %c0_i32, %c0_i32_0, %c0_i32_1 : i32, i32, i32, i32
  }
  func.func @transform_1(%arg0: i32, %arg1: i32, %arg2: i32) -> (i32, i32, i32) {
    %c0_i32 = arith.constant 0 : i32
    %c0_i32_0 = arith.constant 0 : i32
    %c0_i32_1 = arith.constant 0 : i32
    return %c0_i32, %c0_i32_0, %arg1 : i32, i32, i32
  }
  func.func @transform_2(%arg0: i32, %arg1: i32, %arg2: i32) -> (i32, i32) {
    %c0_i32 = arith.constant 0 : i32
    %c0_i32_0 = arith.constant 0 : i32
    return %c0_i32, %arg1 : i32, i32
  }
  func.func @transform_3(%arg0: i32, %arg1: i32, %arg2: i32) -> (i32, i32, i32, i32) {
    %c0_i32 = arith.constant 0 : i32
    %c0_i32_0 = arith.constant 0 : i32
    return %arg0, %arg2, %c0_i32, %arg1 : i32, i32, i32, i32
  }
}

</mosaic_0001>

<bundles_post_ra>
// kernel: tpu_custom_call.1
= control target key start
LH: loop header
LB: loop body
LE: loop exit
PB: predicated region body
PF: predicated region fallthrough
CT: control target
= control target key end

     0   :  { %8 = vsyncpa [#allocation3], 0  ;;  %s2773_s0 = inlined_call_operand.vmem [shape: bf16[2,18,16,12], index: 0, kind: input, shape index: {}]   ;;  %s2774_s1 = inlined_call_operand.vmem [shape: bf16[3,12,128], index: 1, kind: input, shape index: {}]   ;;  %s2775_s2 = inlined_call_operand.vmem [shape: f32[1,128], index: 2, kind: input, shape index: {}]   ;;  %s2776_s3 = inlined_call_operand.hbm [shape: bf16[2,16,16,128], index: 3, kind: output, shape index: {}]  }
   0x1   :  { %10 = vsyncpa [#allocation3 + $0x1], 0  ;;  %s2404_s12 = smov 0   ;;  %s2406_s13 = smov 0  }
   0x2   :  { %s2408_s14 = smov 0   ;;  %s2410_s15 = smov 0  }
   0x3   :  { %s2412_s16 = smov 0   ;;  %s2414_s17 = smov 0  }
   0x4 LB: > { %s1693_s18 = sadd.s32 4294967295, %s2379_s17   ;;  %s1694_s19 = sadd.s32 4294967294, %s2379_s17   ;;  %s2379_s17 = sphi %s2414_s17, %s16_s17   ;;  %s2375_s16 = sphi %s2412_s16, %s2783_s16   ;;  %s2371_s15 = sphi %s2410_s15, %s2782_s15   ;;  %s2367_s14 = sphi %s2408_s14, %s2781_s14   ;;  %s2363_s13 = sphi %s2406_s13, %s2780_s13   ;;  %s2359_s12 = sphi %s2404_s12, %s2779_s12  }
   0x5   : > { %s35_s20 = sadd.s32 1, %s2375_s16  ;;  %s124_s21 = sadd.s32 1, %s2367_s14 }
   0x6   : > { %p37_p0 = scmp.ge.s32.totalorder %s35_s20, 2  ;;  %p134_p1 = scmp.ne.s32.totalorder %s2367_s14, %s2363_s13 }
   0x7   : > { %p135_p2 = scmp.eq.s32.totalorder %s1693_s18, 1  ;;  %p140_p3 = scmp.ne.s32.totalorder %s2363_s13, %s2359_s12 }
   0x8   : > { %s2785_s20 = smov (%p37_p0, %s35_s20), 0  ;;  %p141_p5 = scmp.eq.s32.totalorder %s1694_s19, 1 }
   0x9   : > { %p2444_p4 = por %p135_p2, %p134_p1  ;;  %s117_s23 = ssub.s32 %s2375_s16, %s2785_s20 }
   0xa   : > { %p1699_p6 = scmp.ge.s32.totalorder %s2379_s17, 1  ;;  %p122_p7 = scmp.eq.s32.totalorder %s117_s23, 0 }
   0xb   : > { %p2451_p8 = por %p141_p5, %p140_p3  ;;  %p180_p9 = scmp.lt.s32.totalorder %s2379_s17, 3 }
   0xc   : > { %s2457_s25 = scalar_select %p122_p7, %s2367_s14, %s124_s21  }
   0xd   : > { %p181_p10 = pnand %p1699_p6, %p180_p9 }
   0xe   : > { %p211_p11 = scmp.lt.s32.totalorder (!%p181_p10), %s2371_s15, 1  ;;  %s208_s18 = sand.u32 (!%p181_p10), 1, %s2363_s13  }
   0xf   : > { %184 = sbr.rel (%p181_p10) target bundleno = 340 (0x154), region = 32  ;;  %s1700_s19 = sshll.u32 (!%p181_p10), %s208_s18, 7 }
  0x10   : > { %s2642_s21 = scalar_lea.vmem (!%p181_p10), [#allocation2], %s1700_s19  ;;  %s1939_s23 = sshll.u32 (!%p181_p10), %s2371_s15, 11 }
  0x11   : > { %s1579_s26 = sshll.u32 (!%p181_p10), %s2642_s21, 4  ;;  %s2721_s29 = scalar_lea.hbm (!%p181_p10), %s2776_s3, %s1939_s23  ;;  %s2723_s26 = int_to_ptr.vmem [resolvable:$true] %s1579_s26 }
  0x12   : > { %s2381_s4 = smov (!%p181_p10), [#allocation2]  }
  0x13   : > { %s2307_s5 = sshll.u32 (!%p181_p10), %s2381_s4, 4  ;;  %s2308_s5 = int_to_ptr.vmem [resolvable:$false] %s2307_s5 }
  0x14   : > { %v2252_v0 = vld [vmem:[%s2774_s1 + $0x8] sm:$0x3f]   ;;  %vm436_vm0 = vcmask 1045504   ;;  %v2255_v2 = vld [vmem:[%s2774_s1] sm:$0x3f]   ;;  %s212_s30 = scalar_select %p211_p11, %s2371_s15, 1 }
  0x15   : > { %2191 = vmatprep.subr.msk.bf16.mxu1 %vm436_vm0, %v2252_v0  ;;  %2190 = vmatprep.subr.msk.bf16.mxu0 %vm436_vm0, %v2252_v0  ;;  %v438_v1 = vsel %vm436_vm0, %v2252_v0, 0  ;;  %v2258_v3 = vld [vmem:[%s2774_s1 + $0x10] sm:$0x3f]   ;;  %vm387_vm1 = vcmask 97280   ;;  %v735_v9 = vsel %vm436_vm0, %v2255_v2, 0  ;;  %s2728_s15 = scalar_lea.sflag [#allocation3], %s208_s18  ;;  %p2310_p1 = scmp.lt.s32.totalorder %s2723_s26, %s2308_s5 }
  0x16   : > { %2189 = vmatpush3.bf16.msra.mxu1 %v438_v1  ;;  %2087 = vmatpush3.bf16.msra.mxu0 %v438_v1  ;;  %s2194_s6 = smul.u32 144, %s212_s30  ;;  %v1071_v7 = vsel %vm436_vm0, %v2258_v3, 0  ;;  %s2303_s30 = scalar_lea.vmem %s2723_s26, 2048 }
  0x17   : > { %2192 = vmatprep.subr.msk.bf16.mxu1 %vm436_vm0, %v2255_v2  ;;  %2193 = vmatprep.subr.msk.bf16.mxu0 %vm436_vm0, %v2258_v3  ;;  %p2304_p12 = scmp.ne.s32.totalorder %s2723_s26, %s2303_s30 }
  0x18   : > { %s2478_s9 = scalar_lea.vmem %s2773_s0, %s2194_s6  ;;  %s2309_s6 = scalar_lea.vmem %s2308_s5, 4096 }
  0x19   : > { %v2253_v4 = vld [vmem:[%s2478_s9 + $0x8] sm:$0xff]   ;;  %v2256_v6 = vld [vmem:[%s2478_s9 + $0x10] sm:$0xff]   ;;  %v2259_v10 = vld [vmem:[%s2478_s9 + $0x18] sm:$0xff]   ;;  %p2305_p13 = pnand %p2304_p12, %p2444_p4  ;;  %p2311_p2 = scmp.lt.s32.totalorder %s2309_s6, %s2303_s30 }
  0x1a   : > { %v2254_v5 = vld [vmem:[%s2478_s9 + $0x48] sm:$0xff]   ;;  %2088 = vmatprep.mubr.msk.bf16.mxu0 %vm387_vm1, %v2253_v4  ;;  %v2257_v8 = vld [vmem:[%s2478_s9 + $0x50] sm:$0xff]   ;;  %v2260_v11 = vld [vmem:[%s2478_s9 + $0x58] sm:$0xff]  }
  0x1b   : > { %2104 = vmatprep.mubr.msk.bf16.mxu1 %vm387_vm1, %v2254_v5  ;;  %2089 = vmatmul.mubr.msk.bf16.vlgmr.msra.gmra.mxu0 %vm387_vm1, %v2256_v6  ;;  %v2261_v12 = vld [vmem:[%s2478_s9 + $0x20] sm:$0xff]   ;;  %v2263_v14 = vld [vmem:[%s2478_s9 + $0x28] sm:$0xff]   ;;  %v2265_v16 = vld [vmem:[%s2478_s9 + $0x30] sm:$0xff]   ;;  %p2306_p0 = pneg %p2305_p13  ;;  %p2312_p3 = por %p2311_p2, %p2310_p1 }
  0x1c   : > { %2105 = vmatmul.mubr.msk.bf16.vlgmr.msra.gmra.mxu1 %vm387_vm1, %v2257_v8  ;;  %2155 = vmatpush3.bf16.msra.mxu0 %v1071_v7  ;;  %v2262_v13 = vld [vmem:[%s2478_s9 + $0x60] sm:$0xff]   ;;  %v2264_v15 = vld [vmem:[%s2478_s9 + $0x68] sm:$0xff]   ;;  %v2266_v17 = vld [vmem:[%s2478_s9 + $0x70] sm:$0xff]  }
  0x1d   : > { %2121 = vmatpush3.bf16.msra.mxu1 %v735_v9  ;;  %2092 = vmatprep.mubr.msk.bf16.mxu0 %vm387_vm1, %v2259_v10  ;;  %v2267_v18 = vld [vmem:[%s2478_s9 + $0x38] sm:$0xff]   ;;  %v2269_v20 = vld [vmem:[%s2478_s9 + $0x40] sm:$0xff]   ;;  %v2272_v22 = vld [vmem:[%s2478_s9 + $0x10] sm:$0xff]   ;;  %p2313_p5 = pnand %p2312_p3, %p2306_p0 }
  0x1e   : > { %2108 = vmatprep.mubr.msk.bf16.mxu1 %vm387_vm1, %v2260_v11  ;;  %v2268_v19 = vld [vmem:[%s2478_s9 + $0x78] sm:$0xff]   ;;  %v2270_v21 = vld [vmem:[%s2478_s9 + $0x80] sm:$0xff]   ;;  %v2273_v24 = vld [vmem:[%s2478_s9 + $0x8] sm:$0xff]  }
  0x1f   : > { %v2271_v23 = vld [vmem:[%s2478_s9] sm:$0xff]   ;;  %v2274_v25 = vld [vmem:[%s2478_s9 + $0x18] sm:$0xff]   ;;  %v2275_v27 = vld [vmem:[%s2478_s9 + $0x10] sm:$0xff]  }
  0x20   : > { %v2276_v26 = vld [vmem:[%s2478_s9 + $0x20] sm:$0xff]   ;;  %v2277_v28 = vld [vmem:[%s2478_s9 + $0x18] sm:$0xff]   ;;  %v2278_v29 = vld [vmem:[%s2478_s9 + $0x28] sm:$0xff]  }
  0x21   : > { %v2280_v30 = vld [vmem:[%s2478_s9 + $0x30] sm:$0xff]   ;;  %v2279_v31 = vld [vmem:[%s2478_s9 + $0x20] sm:$0xff]   ;;  %v2282_v32 = vld [vmem:[%s2478_s9 + $0x38] sm:$0xff]  }
  0x22   : > { %v2281_v33 = vld [vmem:[%s2478_s9 + $0x28] sm:$0xff]   ;;  %v2284_v34 = vld [vmem:[%s2478_s9 + $0x40] sm:$0xff]   ;;  %v2283_v35 = vld [vmem:[%s2478_s9 + $0x30] sm:$0xff]  }
  0x23   : > { %2093 = vmatmul.mubr.msk.bf16.gmra.mxu0 %vm387_vm1, %v2261_v12  ;;  %v2286_v36 = vld [vmem:[%s2478_s9 + $0x48] sm:$0xff]   ;;  %v2285_v37 = vld [vmem:[%s2478_s9 + $0x38] sm:$0xff]   ;;  %v2288_v38 = vld [vmem:[%s2478_s9 + $0x50] sm:$0xff]  }
  0x24   : > { %2109 = vmatmul.mubr.msk.bf16.gmra.mxu1 %vm387_vm1, %v2262_v13  ;;  %2096 = vmatprep.mubr.msk.bf16.mxu0 %vm387_vm1, %v2263_v14  ;;  %v2287_v39 = vld [vmem:[%s2478_s9 + $0x40] sm:$0xff]   ;;  %v2290_v40 = vld [vmem:[%s2478_s9 + $0x58] sm:$0xff]   ;;  %v2289_v41 = vld [vmem:[%s2478_s9 + $0x48] sm:$0xff]  }
  0x25   : > { %2112 = vmatprep.mubr.msk.bf16.mxu1 %vm387_vm1, %v2264_v15  ;;  %v2292_v42 = vld [vmem:[%s2478_s9 + $0x60] sm:$0xff]   ;;  %v2291_v43 = vld [vmem:[%s2478_s9 + $0x50] sm:$0xff]   ;;  %v2294_v44 = vld [vmem:[%s2478_s9 + $0x68] sm:$0xff]  }
  0x26   : > { %v2293_v45 = vld [vmem:[%s2478_s9 + $0x58] sm:$0xff]   ;;  %v2296_v46 = vld [vmem:[%s2478_s9 + $0x70] sm:$0xff]   ;;  %v2295_v47 = vld [vmem:[%s2478_s9 + $0x60] sm:$0xff]  }
  0x27   : > { %v2298_v48 = vld [vmem:[%s2478_s9 + $0x78] sm:$0xff]   ;;  %v2297_v49 = vld [vmem:[%s2478_s9 + $0x68] sm:$0xff]   ;;  %v2300_v50 = vld [vmem:[%s2478_s9 + $0x80] sm:$0xff]  }
  0x28   : > { %v2299_v51 = vld [vmem:[%s2478_s9 + $0x70] sm:$0xff]   ;;  %v2302_v52 = vld [vmem:[%s2478_s9 + $0x88] sm:$0xff]   ;;  %v2301_v53 = vld [vmem:[%s2478_s9 + $0x78] sm:$0xff]  }
  0x2b   : > { %2097 = vmatmul.mubr.msk.bf16.gmra.mxu0 %vm387_vm1, %v2265_v16 }
  0x2c   : > { %2113 = vmatmul.mubr.msk.bf16.gmra.mxu1 %vm387_vm1, %v2266_v17  ;;  %2100 = vmatprep.mubr.msk.bf16.mxu0 %vm387_vm1, %v2267_v18 }
  0x2d   : > { %2116 = vmatprep.mubr.msk.bf16.mxu1 %vm387_vm1, %v2268_v19 }
  0x33   : > { %2101 = vmatmul.mubr.msk.bf16.gmra.mxu0 %vm387_vm1, %v2269_v20 }
  0x34   : > { %2117 = vmatmul.mubr.msk.bf16.gmra.mxu1 %vm387_vm1, %v2270_v21  ;;  %2156 = vmatprep.mubr.msk.bf16.mxu0 %vm387_vm1, %v2272_v22 }
  0x35   : > { %2122 = vmatprep.mubr.msk.bf16.mxu1 %vm387_vm1, %v2271_v23 }
  0x3b   : > { %2157 = vmatmul.mubr.msk.bf16.vlgmr.msra.gmra.mxu0 %vm387_vm1, %v2274_v25 }
  0x3c   : > { %2123 = vmatmul.mubr.msk.bf16.vlgmr.msra.gmra.mxu1 %vm387_vm1, %v2273_v24  ;;  %2160 = vmatprep.mubr.msk.bf16.mxu0 %vm387_vm1, %v2276_v26  ;;  %v2631_v26 = vld [vmem:[%s2775_s2] ss:$0 sm:$0xff] }
  0x3d   : > { %2126 = vmatprep.mubr.msk.bf16.mxu1 %vm387_vm1, %v2275_v27 }
  0x43   : > { %2161 = vmatmul.mubr.msk.bf16.gmra.mxu0 %vm387_vm1, %v2278_v29 }
  0x44   : > { %2127 = vmatmul.mubr.msk.bf16.gmra.mxu1 %vm387_vm1, %v2277_v28  ;;  %2164 = vmatprep.mubr.msk.bf16.mxu0 %vm387_vm1, %v2280_v30 }
  0x45   : > { %2130 = vmatprep.mubr.msk.bf16.mxu1 %vm387_vm1, %v2279_v31 }
  0x4b   : > { %2165 = vmatmul.mubr.msk.bf16.gmra.mxu0 %vm387_vm1, %v2282_v32 }
  0x4c   : > { %2131 = vmatmul.mubr.msk.bf16.gmra.mxu1 %vm387_vm1, %v2281_v33  ;;  %2168 = vmatprep.mubr.msk.bf16.mxu0 %vm387_vm1, %v2284_v34 }
  0x4d   : > { %2134 = vmatprep.mubr.msk.bf16.mxu1 %vm387_vm1, %v2283_v35 }
  0x53   : > { %2169 = vmatmul.mubr.msk.bf16.gmra.mxu0 %vm387_vm1, %v2286_v36 }
  0x54   : > { %2135 = vmatmul.mubr.msk.bf16.gmra.mxu1 %vm387_vm1, %v2285_v37  ;;  %2172 = vmatprep.mubr.msk.bf16.mxu0 %vm387_vm1, %v2288_v38 }
  0x55   : > { %2138 = vmatprep.mubr.msk.bf16.mxu1 %vm387_vm1, %v2287_v39 }
  0x5b   : > { %2173 = vmatmul.mubr.msk.bf16.gmra.mxu0 %vm387_vm1, %v2290_v40 }
  0x5c   : > { %2139 = vmatmul.mubr.msk.bf16.gmra.mxu1 %vm387_vm1, %v2289_v41  ;;  %2176 = vmatprep.mubr.msk.bf16.mxu0 %vm387_vm1, %v2292_v42 }
  0x5d   : > { %2142 = vmatprep.mubr.msk.bf16.mxu1 %vm387_vm1, %v2291_v43 }
  0x63   : > { %2177 = vmatmul.mubr.msk.bf16.gmra.mxu0 %vm387_vm1, %v2294_v44 }
  0x64   : > { %2143 = vmatmul.mubr.msk.bf16.gmra.mxu1 %vm387_vm1, %v2293_v45  ;;  %2180 = vmatprep.mubr.msk.bf16.mxu0 %vm387_vm1, %v2296_v46 }
  0x65   : > { %2146 = vmatprep.mubr.msk.bf16.mxu1 %vm387_vm1, %v2295_v47 }
  0x6b   : > { %2181 = vmatmul.mubr.msk.bf16.gmra.mxu0 %vm387_vm1, %v2298_v48 }
  0x6c   : > { %2147 = vmatmul.mubr.msk.bf16.gmra.mxu1 %vm387_vm1, %v2297_v49  ;;  %2184 = vmatprep.mubr.msk.bf16.mxu0 %vm387_vm1, %v2300_v50 }
  0x6d   : > { %2150 = vmatprep.mubr.msk.bf16.mxu1 %vm387_vm1, %v2299_v51 }
  0x73   : > { %2185 = vmatmul.mubr.msk.bf16.gmra.mxu0 %vm387_vm1, %v2302_v52 }
  0x74   : > { %2151 = vmatmul.mubr.msk.bf16.gmra.mxu1 %vm387_vm1, %v2301_v53 }
  0xdb   : > { %v2090_v54 = vpop.f32.mrf.mxu0 }
  0xdc   : > { %v2578_v55 = vpop.f32.mrf.mxu1 }
  0xdd   : > { %v474_v56 = vpop.f32.mrf.mxu0 }
  0xde   : > { %v2580_v57 = vpop.f32.mrf.mxu1 }
  0xdf   : > { %v2091_v58 = vpop.f32.mrf.mxu0 }
  0xe0   : > { %v2582_v59 = vpop.f32.mrf.mxu1 }
  0xe1   : > { %v477_v60 = vpop.f32.mrf.mxu0 }
  0xe2   : > { %v2584_v61 = vpop.f32.mrf.mxu1 }
  0xe3   : > { %v2094_v62 = vpop.f32.mrf.mxu0 }
  0xe4   : > { %v2586_v63 = vpop.f32.mrf.mxu1 }
  0xe5   : > { %v490_v0 = vpop.f32.mrf.mxu0 }
  0xe6   : > { %v2588_v1 = vpop.f32.mrf.mxu1 }
  0xe7   : > { %v2095_v2 = vpop.f32.mrf.mxu0 }
  0xe8   : > { %v2590_v3 = vpop.f32.mrf.mxu1 }
  0xe9   : > { %v2592_v4 = vpop.f32.mrf.mxu0 }
  0xea   : > { %v2594_v5 = vpop.f32.mrf.mxu1 }
  0xeb   : > { %v2596_v6 = vpop.f32.mrf.mxu0 }
  0xec   : > { %v2598_v7 = vpop.f32.mrf.mxu1 }
  0xed   : > { %v2600_v8 = vpop.f32.mrf.mxu0 }
  0xee   : > { %v2602_v9 = vpop.f32.mrf.mxu1 }
  0xef   : > { %v2604_v10 = vpop.f32.mrf.mxu0 }
  0xf0   : > { %v2606_v11 = vpop.f32.mrf.mxu1 }
  0xf1   : > { %v2608_v12 = vpop.f32.mrf.mxu0 }
  0xf2   : > { %v2610_v13 = vpop.f32.mrf.mxu1 }
  0xf3   : > { %v2612_v14 = vpop.f32.mrf.mxu0 }
  0xf4   : > { %v2614_v15 = vpop.f32.mrf.mxu1 }
  0xf5   : > { %v2616_v16 = vpop.f32.mrf.mxu0 }
  0xf6   : > { %v2618_v17 = vpop.f32.mrf.mxu1 }
  0xf7   : > { %v2620_v18 = vpop.f32.mrf.mxu0 }
  0xf8   : > { %v2622_v19 = vpop.f32.mrf.mxu1 }
  0xf9   : > { %v2624_v20 = vpop.f32.mrf.mxu0 }
  0xfa   : > { %v2626_v21 = vpop.f32.mrf.mxu1 }
  0xfb   : > { %v2158_v22 = vpop.f32.mrf.mxu0 }
  0xfc   : > { %v2124_v23 = vpop.f32.mrf.mxu1 }
  0xfd   : > { %v780_v24 = vadd.f32 %v2124_v23, %v2090_v54  ;;  %v1107_v25 = vpop.f32.mrf.mxu0 }
  0xfe   : > { %v771_v27 = vpop.f32.mrf.mxu1 }
  0xff   : > { %v1236_v28 = vadd.f32 %v2158_v22, %v780_v24  ;;  %v772_v29 = vadd.f32 %v771_v27, %v474_v56  ;;  %v2159_v30 = vpop.f32.mrf.mxu0 }
 0x100   : > { %v2125_v31 = vpop.f32.mrf.mxu1 }
 0x101   : > { %v1275_v32 = vadd.f32 %v2631_v26, %v1236_v28  ;;  %v1234_v33 = vadd.f32 %v1107_v25, %v772_v29  ;;  %v783_v34 = vadd.f32 %v2125_v31, %v2091_v58  ;;  %v1110_v35 = vpop.f32.mrf.mxu0 }
 0x102   : > { %v774_v36 = vpop.f32.mrf.mxu1 }
 0x103   : > { %v1237_v37 = vadd.f32 %v2159_v30, %v783_v34  ;;  %v2162_v38 = vpop.f32.mrf.mxu0  ;;  %v1339_v39 = vmul.f32 0.2, %v1275_v32  ;;  %v1273_v40 = vadd.f32 %v2631_v26, %v1234_v33  ;;  %v775_v41 = vadd.f32 %v774_v36, %v477_v60 }
 0x104   : > { %v2128_v42 = vpop.f32.mrf.mxu1  ;;  %vm1307_vm2 = vcmp.ge.f32.partialorder %v1275_v32, 0.0 }
 0x105   : > { %v1276_v43 = vadd.f32 %v2631_v26, %v1237_v37  ;;  %v1123_v44 = vpop.f32.mrf.mxu0  ;;  %v1235_v45 = vadd.f32 %v1110_v35, %v775_v41  ;;  %v796_v46 = vadd.f32 %v2128_v42, %v2094_v62  ;;  %v1371_v51 = vsel %vm1307_vm2, %v1275_v32, %v1339_v39 }
 0x106   : > { %v787_v47 = vpop.f32.mrf.mxu1  ;;  %v1337_v52 = vmul.f32 0.2, %v1273_v40  ;;  %vm1305_vm4 = vcmp.ge.f32.partialorder %v1273_v40, 0.0 }
 0x107   : > { %vm1308_vm3 = vcmp.ge.f32.partialorder %v1276_v43, 0.0  ;;  %v1340_v48 = vmul.f32 0.2, %v1276_v43  ;;  %v788_v49 = vadd.f32 %v787_v47, %v490_v0  ;;  %v2163_v50 = vpop.f32.mrf.mxu0  ;;  %v1274_v53 = vadd.f32 %v2631_v26, %v1235_v45 }
 0x108   : > { %v1240_v54 = vadd.f32 %v2162_v38, %v796_v46  ;;  %v2129_v56 = vpop.f32.mrf.mxu1  ;;  %v1369_v30 = vsel %vm1305_vm4, %v1273_v40, %v1337_v52 }
 0x109   : > { %v1372_v58 = vsel %vm1308_vm3, %v1276_v43, %v1340_v48  ;;  %v1238_v60 = vadd.f32 %v1123_v44, %v788_v49  ;;  %v799_v22 = vadd.f32 %v2129_v56, %v2095_v2  ;;  %v1126_v23 = vpop.f32.mrf.mxu0  ;;  %vm1306_vm5 = vcmp.ge.f32.partialorder %v1274_v53, 0.0 }
 0x10a   : > { %v1948_v24 = vpack.c.bf16 %v1372_v58, %v1371_v51  ;;  %v1338_v25 = vmul.f32 0.2, %v1274_v53  ;;  %v1279_v62 = vadd.f32 %v2631_v26, %v1240_v54  ;;  %v790_v27 = vpop.f32.mrf.mxu1 }
 0x10b   : > { %v1241_v28 = vadd.f32 %v2163_v50, %v799_v22  ;;  %v791_v0 = vadd.f32 %v790_v27, %v2592_v4  ;;  %v2166_v29 = vpop.f32.mrf.mxu0  ;;  %v1277_v2 = vadd.f32 %v2631_v26, %v1238_v60 }
 0x10c   : > { %2020 = vst [vmem:[%s2642_s21 + $0x8] sm:$0xff] %v1948_v24   ;;  %v1370_v31 = vsel %vm1306_vm5, %v1274_v53, %v1338_v25  ;;  %v2132_v32 = vpop.f32.mrf.mxu1  ;;  %v1343_v34 = vmul.f32 0.2, %v1279_v62  ;;  %vm1311_vm6 = vcmp.ge.f32.partialorder %v1279_v62, 0.0 }
 0x10d   : > { %v1943_v33 = vpack.c.bf16 %v1370_v31, %v1369_v30  ;;  %v1280_v35 = vadd.f32 %v2631_v26, %v1241_v28  ;;  %v1139_v36 = vpop.f32.mrf.mxu0  ;;  %v1239_v37 = vadd.f32 %v1126_v23, %v791_v0  ;;  %v812_v4 = vadd.f32 %v2132_v32, %v2596_v6 }
 0x10e   : > { %v803_v38 = vpop.f32.mrf.mxu1  ;;  %vm1309_vm8 = vcmp.ge.f32.partialorder %v1277_v2, 0.0  ;;  %v1341_v42 = vmul.f32 0.2, %v1277_v2  ;;  %v1375_v46 = vsel %vm1311_vm6, %v1279_v62, %v1343_v34 }
 0x10f   : > { %1944 = vst [vmem:[%s2642_s21] sm:$0xff] %v1943_v33   ;;  %vm1312_vm7 = vcmp.ge.f32.partialorder %v1280_v35, 0.0  ;;  %v1344_v39 = vmul.f32 0.2, %v1280_v35  ;;  %v804_v40 = vadd.f32 %v803_v38, %v2600_v8  ;;  %v2167_v41 = vpop.f32.mrf.mxu0  ;;  %v1278_v43 = vadd.f32 %v2631_v26, %v1239_v37 }
 0x110   : > { %v1244_v44 = vadd.f32 %v2166_v29, %v812_v4  ;;  %v2133_v45 = vpop.f32.mrf.mxu1  ;;  %v1373_v58 = vsel %vm1309_vm8, %v1277_v2, %v1341_v42 }
 0x111   : > { %v1376_v47 = vsel %vm1312_vm7, %v1280_v35, %v1344_v39  ;;  %v1242_v48 = vadd.f32 %v1139_v36, %v804_v40  ;;  %v815_v49 = vadd.f32 %v2133_v45, %v2604_v10  ;;  %v1142_v6 = vpop.f32.mrf.mxu0  ;;  %vm1310_vm9 = vcmp.ge.f32.partialorder %v1278_v43, 0.0 }
 0x112   : > { %v1958_v50 = vpack.c.bf16 %v1376_v47, %v1375_v46  ;;  %v1342_v51 = vmul.f32 0.2, %v1278_v43  ;;  %v1283_v52 = vadd.f32 %v2631_v26, %v1244_v44  ;;  %v806_v8 = vpop.f32.mrf.mxu1 }
 0x113   : > { %v1245_v53 = vadd.f32 %v2167_v41, %v815_v49  ;;  %v807_v54 = vadd.f32 %v806_v8, %v2608_v12  ;;  %v2170_v56 = vpop.f32.mrf.mxu0  ;;  %v1281_v22 = vadd.f32 %v2631_v26, %v1242_v48 }
 0x114   : > { %2022 = vst [vmem:[%s2642_s21 + $0x18] sm:$0xff] %v1958_v50   ;;  %v1374_v60 = vsel %vm1310_vm9, %v1278_v43, %v1342_v51  ;;  %v2136_v23 = vpop.f32.mrf.mxu1  ;;  %v1347_v24 = vmul.f32 0.2, %v1283_v52  ;;  %vm1315_vm10 = vcmp.ge.f32.partialorder %v1283_v52, 0.0 }
 0x115   : > { %v1953_v10 = vpack.c.bf16 %v1374_v60, %v1373_v58  ;;  %v1284_v25 = vadd.f32 %v2631_v26, %v1245_v53  ;;  %v1155_v62 = vpop.f32.mrf.mxu0  ;;  %v1243_v27 = vadd.f32 %v1142_v6, %v807_v54  ;;  %v828_v28 = vadd.f32 %v2136_v23, %v2612_v14 }
 0x116   : > { %v819_v0 = vpop.f32.mrf.mxu1  ;;  %vm1313_vm12 = vcmp.ge.f32.partialorder %v1281_v22, 0.0  ;;  %v1345_v31 = vmul.f32 0.2, %v1281_v22  ;;  %v1379_v34 = vsel %vm1315_vm10, %v1283_v52, %v1347_v24 }
 0x117   : > { %2021 = vst [vmem:[%s2642_s21 + $0x10] sm:$0xff] %v1953_v10   ;;  %vm1316_vm11 = vcmp.ge.f32.partialorder %v1284_v25, 0.0  ;;  %v1348_v12 = vmul.f32 0.2, %v1284_v25  ;;  %v820_v29 = vadd.f32 %v819_v0, %v2616_v16  ;;  %v2171_v30 = vpop.f32.mrf.mxu0  ;;  %v1282_v2 = vadd.f32 %v2631_v26, %v1243_v27 }
 0x118   : > { %v1248_v32 = vadd.f32 %v2170_v56, %v828_v28  ;;  %v2137_v33 = vpop.f32.mrf.mxu1  ;;  %v1377_v43 = vsel %vm1313_vm12, %v1281_v22, %v1345_v31 }
 0x119   : > { %v1380_v35 = vsel %vm1316_vm11, %v1284_v25, %v1348_v12  ;;  %v1246_v36 = vadd.f32 %v1155_v62, %v820_v29  ;;  %v831_v37 = vadd.f32 %v2137_v33, %v2620_v18  ;;  %v1158_v14 = vpop.f32.mrf.mxu0  ;;  %vm1314_vm13 = vcmp.ge.f32.partialorder %v1282_v2, 0.0 }
 0x11a   : > { %v1968_v4 = vpack.c.bf16 %v1380_v35, %v1379_v34  ;;  %v1346_v38 = vmul.f32 0.2, %v1282_v2  ;;  %v1287_v39 = vadd.f32 %v2631_v26, %v1248_v32  ;;  %v822_v16 = vpop.f32.mrf.mxu1 }
 0x11b   : > { %v1249_v40 = vadd.f32 %v2171_v30, %v831_v37  ;;  %v823_v41 = vadd.f32 %v822_v16, %v2624_v20  ;;  %v2174_v42 = vpop.f32.mrf.mxu0  ;;  %v1285_v45 = vadd.f32 %v2631_v26, %v1246_v36 }
 0x11c   : > { %2024 = vst [vmem:[%s2642_s21 + $0x28] sm:$0xff] %v1968_v4   ;;  %v1378_v44 = vsel %vm1314_vm13, %v1282_v2, %v1346_v38  ;;  %v2140_v46 = vpop.f32.mrf.mxu1  ;;  %v1351_v47 = vmul.f32 0.2, %v1287_v39  ;;  %vm1319_vm14 = vcmp.ge.f32.partialorder %v1287_v39, 0.0 }
 0x11d   : > { %v1963_v18 = vpack.c.bf16 %v1378_v44, %v1377_v43  ;;  %v1288_v48 = vadd.f32 %v2631_v26, %v1249_v40  ;;  %v1171_v49 = vpop.f32.mrf.mxu0  ;;  %v1247_v6 = vadd.f32 %v1158_v14, %v823_v41  ;;  %v844_v50 = vadd.f32 %v2140_v46, %v2578_v55 }
 0x11e   : > { %v835_v51 = vpop.f32.mrf.mxu1  ;;  %vm1317_vm0 = vcmp.ge.f32.partialorder %v1285_v45, 0.0  ;;  %v1349_v53 = vmul.f32 0.2, %v1285_v45  ;;  %v1383_v60 = vsel %vm1319_vm14, %v1287_v39, %v1351_v47 }
 0x11f   : > { %2023 = vst [vmem:[%s2642_s21 + $0x20] sm:$0xff] %v1963_v18   ;;  %vm1320_vm15 = vcmp.ge.f32.partialorder %v1288_v48, 0.0  ;;  %v1352_v20 = vmul.f32 0.2, %v1288_v48  ;;  %v836_v52 = vadd.f32 %v835_v51, %v2580_v57  ;;  %v2175_v8 = vpop.f32.mrf.mxu0  ;;  %v1286_v54 = vadd.f32 %v2631_v26, %v1247_v6 }
 0x120   : > { %v1252_v56 = vadd.f32 %v2174_v42, %v844_v50  ;;  %v2141_v58 = vpop.f32.mrf.mxu1  ;;  %v1381_v12 = vsel %vm1317_vm0, %v1285_v45, %v1349_v53 }
 0x121   : > { %v1384_v22 = vsel %vm1320_vm15, %v1288_v48, %v1352_v20  ;;  %v1250_v23 = vadd.f32 %v1171_v49, %v836_v52  ;;  %v847_v10 = vadd.f32 %v2141_v58, %v2582_v59  ;;  %v1174_v55 = vpop.f32.mrf.mxu0  ;;  %vm1318_vm1 = vcmp.ge.f32.partialorder %v1286_v54, 0.0 }
 0x122   : > { %v1978_v24 = vpack.c.bf16 %v1384_v22, %v1383_v60  ;;  %v1350_v25 = vmul.f32 0.2, %v1286_v54  ;;  %v1291_v62 = vadd.f32 %v2631_v26, %v1252_v56  ;;  %v838_v57 = vpop.f32.mrf.mxu1 }
 0x123   : > { %v1253_v27 = vadd.f32 %v2175_v8, %v847_v10  ;;  %v839_v28 = vadd.f32 %v838_v57, %v2584_v61  ;;  %v2178_v0 = vpop.f32.mrf.mxu0  ;;  %v1289_v30 = vadd.f32 %v2631_v26, %v1250_v23 }
 0x124   : > { %2026 = vst [vmem:[%s2642_s21 + $0x38] sm:$0xff] %v1978_v24   ;;  %v1382_v29 = vsel %vm1318_vm1, %v1286_v54, %v1350_v25  ;;  %v2144_v31 = vpop.f32.mrf.mxu1  ;;  %v1355_v2 = vmul.f32 0.2, %v1291_v62  ;;  %vm1323_vm2 = vcmp.ge.f32.partialorder %v1291_v62, 0.0 }
 0x125   : > { %v1973_v59 = vpack.c.bf16 %v1382_v29, %v1381_v12  ;;  %v1292_v32 = vadd.f32 %v2631_v26, %v1253_v27  ;;  %v1187_v33 = vpop.f32.mrf.mxu0  ;;  %v1251_v34 = vadd.f32 %v1174_v55, %v839_v28  ;;  %v860_v35 = vadd.f32 %v2144_v31, %v2586_v63 }
 0x126   : > { %v851_v36 = vpop.f32.mrf.mxu1  ;;  %vm1321_vm4 = vcmp.ge.f32.partialorder %v1289_v30, 0.0  ;;  %v1353_v4 = vmul.f32 0.2, %v1289_v30  ;;  %v1387_v40 = vsel %vm1323_vm2, %v1291_v62, %v1355_v2 }
 0x127   : > { %2025 = vst [vmem:[%s2642_s21 + $0x30] sm:$0xff] %v1973_v59   ;;  %vm1324_vm3 = vcmp.ge.f32.partialorder %v1292_v32, 0.0  ;;  %v1356_v61 = vmul.f32 0.2, %v1292_v32  ;;  %v852_v37 = vadd.f32 %v851_v36, %v2588_v1  ;;  %v2179_v14 = vpop.f32.mrf.mxu0  ;;  %v1290_v38 = vadd.f32 %v2631_v26, %v1251_v34 }
 0x128   : > { %v1256_v39 = vadd.f32 %v2178_v0, %v860_v35  ;;  %v2145_v16 = vpop.f32.mrf.mxu1  ;;  %v1385_v49 = vsel %vm1321_vm4, %v1289_v30, %v1353_v4 }
 0x129   : > { %v1388_v41 = vsel %vm1324_vm3, %v1292_v32, %v1356_v61  ;;  %v1254_v42 = vadd.f32 %v1187_v33, %v852_v37  ;;  %v863_v43 = vadd.f32 %v2145_v16, %v2590_v3  ;;  %v1190_v63 = vpop.f32.mrf.mxu0  ;;  %vm1322_vm5 = vcmp.ge.f32.partialorder %v1290_v38, 0.0 }
 0x12a   : > { %v1988_v44 = vpack.c.bf16 %v1388_v41, %v1387_v40  ;;  %v1354_v45 = vmul.f32 0.2, %v1290_v38  ;;  %v1295_v46 = vadd.f32 %v2631_v26, %v1256_v39  ;;  %v854_v1 = vpop.f32.mrf.mxu1 }
 0x12b   : > { %v1257_v18 = vadd.f32 %v2179_v14, %v863_v43  ;;  %v855_v47 = vadd.f32 %v854_v1, %v2594_v5  ;;  %v2182_v48 = vpop.f32.mrf.mxu0  ;;  %v1293_v50 = vadd.f32 %v2631_v26, %v1254_v42 }
 0x12c   : > { %2028 = vst [vmem:[%s2642_s21 + $0x48] sm:$0xff] %v1988_v44   ;;  %v1386_v6 = vsel %vm1322_vm5, %v1290_v38, %v1354_v45  ;;  %v2148_v51 = vpop.f32.mrf.mxu1  ;;  %v1359_v20 = vmul.f32 0.2, %v1295_v46  ;;  %vm1327_vm6 = vcmp.ge.f32.partialorder %v1295_v46, 0.0 }
 0x12d   : > { %v1983_v3 = vpack.c.bf16 %v1386_v6, %v1385_v49  ;;  %v1296_v52 = vadd.f32 %v2631_v26, %v1257_v18  ;;  %v1203_v8 = vpop.f32.mrf.mxu0  ;;  %v1255_v53 = vadd.f32 %v1190_v63, %v855_v47  ;;  %v876_v54 = vadd.f32 %v2148_v51, %v2598_v7 }
 0x12e   : > { %v867_v56 = vpop.f32.mrf.mxu1  ;;  %vm1325_vm8 = vcmp.ge.f32.partialorder %v1293_v50, 0.0  ;;  %v1357_v22 = vmul.f32 0.2, %v1293_v50  ;;  %v1391_v24 = vsel %vm1327_vm6, %v1295_v46, %v1359_v20 }
 0x12f   : > { %2027 = vst [vmem:[%s2642_s21 + $0x40] sm:$0xff] %v1983_v3   ;;  %vm1328_vm7 = vcmp.ge.f32.partialorder %v1296_v52, 0.0  ;;  %v1360_v5 = vmul.f32 0.2, %v1296_v52  ;;  %v868_v58 = vadd.f32 %v867_v56, %v2602_v9  ;;  %v2183_v60 = vpop.f32.mrf.mxu0  ;;  %v1294_v23 = vadd.f32 %v2631_v26, %v1255_v53 }
 0x130   : > { %v1260_v10 = vadd.f32 %v2182_v48, %v876_v54  ;;  %v2149_v55 = vpop.f32.mrf.mxu1  ;;  %v1389_v31 = vsel %vm1325_vm8, %v1293_v50, %v1357_v22 }
 0x131   : > { %v1392_v25 = vsel %vm1328_vm7, %v1296_v52, %v1360_v5  ;;  %v1258_v62 = vadd.f32 %v1203_v8, %v868_v58  ;;  %v879_v57 = vadd.f32 %v2149_v55, %v2606_v11  ;;  %v1206_v7 = vpop.f32.mrf.mxu0  ;;  %vm1326_vm9 = vcmp.ge.f32.partialorder %v1294_v23, 0.0 }
 0x132   : > { %v1998_v27 = vpack.c.bf16 %v1392_v25, %v1391_v24  ;;  %v1358_v28 = vmul.f32 0.2, %v1294_v23  ;;  %v1299_v0 = vadd.f32 %v2631_v26, %v1260_v10  ;;  %v870_v9 = vpop.f32.mrf.mxu1 }
 0x133   : > { %v1261_v12 = vadd.f32 %v2183_v60, %v879_v57  ;;  %v871_v29 = vadd.f32 %v870_v9, %v2610_v13  ;;  %v2186_v30 = vpop.f32.mrf.mxu0  ;;  %v1297_v2 = vadd.f32 %v2631_v26, %v1258_v62 }
 0x134   : > { %2030 = vst [vmem:[%s2642_s21 + $0x58] sm:$0xff] %v1998_v27   ;;  %v1390_v59 = vsel %vm1326_vm9, %v1294_v23, %v1358_v28  ;;  %v2152_v32 = vpop.f32.mrf.mxu1  ;;  %v1363_v33 = vmul.f32 0.2, %v1299_v0  ;;  %vm1331_vm10 = vcmp.ge.f32.partialorder %v1299_v0, 0.0 }
 0x135   : > { %v1993_v11 = vpack.c.bf16 %v1390_v59, %v1389_v31  ;;  %v1300_v34 = vadd.f32 %v2631_v26, %v1261_v12  ;;  %v1219_v35 = vpop.f32.mrf.mxu0  ;;  %v1259_v36 = vadd.f32 %v1206_v7, %v871_v29  ;;  %v892_v61 = vadd.f32 %v2152_v32, %v2614_v15 }
 0x136   : > { %v883_v37 = vpop.f32.mrf.mxu1  ;;  %vm1329_vm12 = vcmp.ge.f32.partialorder %v1297_v2, 0.0  ;;  %v1361_v4 = vmul.f32 0.2, %v1297_v2  ;;  %v1395_v40 = vsel %vm1331_vm10, %v1299_v0, %v1363_v33 }
 0x137   : > { %2029 = vst [vmem:[%s2642_s21 + $0x50] sm:$0xff] %v1993_v11   ;;  %vm1332_vm11 = vcmp.ge.f32.partialorder %v1300_v34, 0.0  ;;  %v1364_v13 = vmul.f32 0.2, %v1300_v34  ;;  %v884_v14 = vadd.f32 %v883_v37, %v2618_v17  ;;  %v1298_v38 = vadd.f32 %v2631_v26, %v1259_v36  ;;  %v2187_v63 = vpop.f32.mrf.mxu0 }
 0x138   : > { %v1264_v39 = vadd.f32 %v2186_v30, %v892_v61  ;;  %v2153_v16 = vpop.f32.mrf.mxu1  ;;  %v1393_v18 = vsel %vm1329_vm12, %v1297_v2, %v1361_v4 }
 0x139   : > { %v1396_v41 = vsel %vm1332_vm11, %v1300_v34, %v1364_v13  ;;  %v1262_v42 = vadd.f32 %v1219_v35, %v884_v14  ;;  %v895_v43 = vadd.f32 %v2153_v16, %v2622_v19  ;;  %vm1330_vm13 = vcmp.ge.f32.partialorder %v1298_v38, 0.0  ;;  %v1222_v50 = vpop.f32.mrf.mxu0 }
 0x13a   : > { %v2008_v15 = vpack.c.bf16 %v1396_v41, %v1395_v40  ;;  %v1362_v44 = vmul.f32 0.2, %v1298_v38  ;;  %v1303_v45 = vadd.f32 %v2631_v26, %v1264_v39  ;;  %v886_v17 = vpop.f32.mrf.mxu1 }
 0x13b   : > { %v1265_v46 = vadd.f32 %v2187_v63, %v895_v43  ;;  %v887_v1 = vadd.f32 %v886_v17, %v2626_v21  ;;  %v1301_v48 = vadd.f32 %v2631_v26, %v1262_v42 }
 0x13c   : > { %2032 = vst [vmem:[%s2642_s21 + $0x68] sm:$0xff] %v2008_v15   ;;  %v1394_v47 = vsel %vm1330_vm13, %v1298_v38, %v1362_v44  ;;  %v1367_v49 = vmul.f32 0.2, %v1303_v45  ;;  %vm1335_vm14 = vcmp.ge.f32.partialorder %v1303_v45, 0.0 }
 0x13d   : > { %v2003_v19 = vpack.c.bf16 %v1394_v47, %v1393_v18  ;;  %v1304_v6 = vadd.f32 %v2631_v26, %v1265_v46  ;;  %v1263_v51 = vadd.f32 %v1222_v50, %v887_v1  ;;  %v1365_v21 = vmul.f32 0.2, %v1301_v48 }
 0x13e   : > { %v1399_v52 = vsel %vm1335_vm14, %v1303_v45, %v1367_v49  ;;  %vm1333_vm0 = vcmp.ge.f32.partialorder %v1301_v48, 0.0 }
 0x13f   : > { %2031 = vst [vmem:[%s2642_s21 + $0x60] sm:$0xff] %v2003_v19   ;;  %vm1336_vm15 = vcmp.ge.f32.partialorder %v1304_v6, 0.0  ;;  %v1368_v3 = vmul.f32 0.2, %v1304_v6  ;;  %v1302_v20 = vadd.f32 %v2631_v26, %v1263_v51  ;;  %v1397_v56 = vsel %vm1333_vm0, %v1301_v48, %v1365_v21 }
 0x141   : > { %v1400_v8 = vsel %vm1336_vm15, %v1304_v6, %v1368_v3  ;;  %vm1334_vm1 = vcmp.ge.f32.partialorder %v1302_v20, 0.0  ;;  %v1366_v54 = vmul.f32 0.2, %v1302_v20 }
 0x142   : > { %v2018_v53 = vpack.c.bf16 %v1400_v8, %v1399_v52 }
 0x143   : > { %v1398_v5 = vsel %vm1334_vm1, %v1302_v20, %v1366_v54 }
 0x144   : > { %2034 = vst [vmem:[%s2642_s21 + $0x78] sm:$0xff] %v2018_v53   ;;  %v2013_v26 = vpack.c.bf16 %v1398_v5, %v1397_v56 }
 0x146   : > { %2033 = vst [vmem:[%s2642_s21 + $0x70] sm:$0xff] %v2013_v26  }
 0x147   : > { %2316 = shalt.err (!%p2313_p5)
}
 0x148   : > { %s2317_s7 = scalar_lea.hbm %s2721_s29, 2048  ;;  %s2321_s10 = scalar_lea.hbm %s2776_s3, 4096 }
 0x149   : > { %p2318_p6 = scmp.ne.s32.totalorder %s2721_s29, %s2317_s7  ;;  %p2322_p10 = scmp.lt.s32.totalorder %s2721_s29, %s2776_s3 }
 0x14a   : > { %p2323_p11 = scmp.lt.s32.totalorder %s2321_s10, %s2317_s7 }
 0x14b   : > { %p2319_p7 = pnand %p2318_p6, %p2444_p4 }
 0x14c   : > { %p2324_p12 = por %p2323_p11, %p2322_p10 }
 0x14d   : > { %p2320_p9 = pneg %p2319_p7 }
 0x14f   : > { %p2325_p13 = pnand %p2324_p12, %p2320_p9 }
 0x151   : > { %2328 = shalt.err (!%p2325_p13)
}
 0x152   : > { %s2382_s19 = smov 64   ;;  %s2383_s21 = smov 4  }
 0x153   : > { %2195 = dma.vmem_to_hbm [thread:$0]  (%p2444_p4), %s2723_s26, 2048, %s2721_s29, %s2728_s15, %s2382_s19, %s2382_s19, %s2383_s21  }
 0x154 PF: > { %p2201_p0 = scmp.ge.s32.totalorder %s2379_s17, 2  ;;  %s1594_s23 = sand.u32 1, %s2359_s12  }
 0x155   : > { %s1595_s27 = scalar_lea.sflag [#allocation3], %s1594_s23 }
 0x156   : > { %p2198_p1 = pnand %p2201_p0, %p2451_p8 }
 0x158   : > { %p2199_p2 = pneg %p2198_p1 }
 0x15a   : > { %2354 = dma.done.wait (%p2199_p2), %s1595_s27, 2048  }
 0x15b   : > { %2356 = vsyncadd (%p2199_p2), %s1595_s27, 4294965248  ;;  %s16_s17 = sadd.s32 1, %s2379_s17   ;;  %s2779_s12 = smov %s2363_s13 }
 0x15c   : > { %p13_p3 = scmp.ge.s32.totalorder %s16_s17, 4   ;;  %s2780_s13 = smov %s2367_s14 }
 0x15d   : > { %s2781_s14 = smov %s2457_s25  ;;  %s2782_s15 = smov %s2375_s16 }
 0x15e   : > { %s2783_s16 = smov %s2785_s20  ;;  %15 = sbr.rel (!%p13_p3) target bundleno = 4 (0x4), region = 78 }
 0x163   :  { %1600 = vsyncpa [#allocation3], 1 }
 0x164   :  { %1602 = vsyncpa [#allocation3 + $0x1], 1 }

</bundles_post_ra>
